<compile_context>
chip_gen: v5e
topology: v5e:2x2
jax: 0.10.0
libtpu: 0.0.40
codegen_flags: <defaults>
</compile_context>

<pallas_src>
import jax
import jax.numpy as jnp
from jax.experimental import pallas as pl
from jax.experimental.pallas import tpu as pltpu

LANE = 128
SUBLANE = 8


def _round_up(n, m):
    return ((n + m - 1) // m) * m


def mlp_kernel(x_ref, w1_ref, b1_ref, w2_ref, b2_ref, o_ref):
    # layer1: x @ W1 + b1 (tiny MXU pass, f32 accumulation); Sigmoid on the EUP.
    h = jnp.dot(x_ref[...], w1_ref[...], preferred_element_type=jnp.float32)
    h = jax.nn.sigmoid(h + b1_ref[...])
    # layer2 against lane-padded (hidden, 128) W2 -> (bm, 128) accumulation in vregs.
    y = jnp.dot(h, w2_ref[...], preferred_element_type=jnp.float32) + b2_ref[...]
    # Only the real output columns go to HBM (narrow masked store; the kernel is
    # HBM-read-bound so the vst.msk cost is hidden).  Padded lanes are never
    # written, and tail rows of a partial batch tile are discarded by Pallas.
    out_n = o_ref.shape[-1]
    o_ref[...] = y[:, :out_n].astype(o_ref.dtype)


def prepare_params(w1, b1, w2, b2):
    """One-time weight prep: lane-pad layer-2 weight/bias to a 128-wide N so the
    second matmul is lane-aligned on the MXU.  Done once so per-call XLA pad ops
    stay off the latency path."""
    hidden, out_size = w2.shape
    n_pad = _round_up(out_size, LANE)
    w2_p = jnp.zeros((hidden, n_pad), w2.dtype).at[:, :out_size].set(w2)
    b2_p = jnp.zeros((1, n_pad), b2.dtype).at[:, :out_size].set(b2)
    return w1, b1, w2_p, b2_p, out_size


def mlp_forward(x, params, *, block_batch=2048):
    """x: (B, in).  params: output of prepare_params()."""
    w1, b1, w2_p, b2_p, out_size = params
    batch, in_size = x.shape
    hidden = w1.shape[1]
    n_pad = w2_p.shape[1]

    # Batch tile: multiple of 8 sublanes, sized to minimize tail waste, and at
    # least 2 grid steps once the batch is non-trivial so both v7x TensorCores
    # get work under dimension_semantics=("parallel",); no-op on v5e/v6e.
    steps = max(1, pl.cdiv(batch, block_batch))
    if steps < 2 and batch > 2 * SUBLANE:
        steps = 2
    bm = _round_up(pl.cdiv(batch, steps), SUBLANE)
    grid = (pl.cdiv(batch, bm),)

    cost = pl.CostEstimate(
        flops=2 * batch * (in_size * hidden + hidden * n_pad),
        transcendentals=batch * hidden,
        bytes_accessed=4 * (x.size + w1.size + b1.size + w2_p.size + b2_p.size
                            + batch * out_size),
    )

    return pl.pallas_call(
        mlp_kernel,
        out_shape=jax.ShapeDtypeStruct((batch, out_size), x.dtype),
        grid=grid,
        in_specs=[
            pl.BlockSpec((bm, in_size), lambda i: (i, 0)),       # x tile (streams; tail tile partial)
            pl.BlockSpec((in_size, hidden), lambda i: (0, 0)),   # w1 (resident)
            pl.BlockSpec((1, hidden), lambda i: (0, 0)),         # b1 (resident)
            pl.BlockSpec((hidden, n_pad), lambda i: (0, 0)),     # w2 lane-padded (resident)
            pl.BlockSpec((1, n_pad), lambda i: (0, 0)),          # b2 lane-padded (resident)
        ],
        out_specs=pl.BlockSpec((bm, out_size), lambda i: (i, 0)),  # narrow output, no pad written
        compiler_params=pltpu.CompilerParams(
            dimension_semantics=("parallel",),
        ),
        cost_estimate=cost,
    )(x, w1, b1, w2_p, b2_p)


def init_params(key, input_size, hidden_size, output_size):
    """Deterministic init mimicking PyTorch nn.Linear default (uniform +/- 1/sqrt(fan_in))."""
    k1, k2, k3, k4 = jax.random.split(key, 4)
    lim1 = 1.0 / jnp.sqrt(float(input_size))
    lim2 = 1.0 / jnp.sqrt(float(hidden_size))
    # Stored as (in_features, out_features) == PyTorch weight transposed.
    w1 = jax.random.uniform(k1, (input_size, hidden_size), jnp.float32, -lim1, lim1)
    b1 = jax.random.uniform(k2, (1, hidden_size), jnp.float32, -lim1, lim1)
    w2 = jax.random.uniform(k3, (hidden_size, output_size), jnp.float32, -lim2, lim2)
    b2 = jax.random.uniform(k4, (1, output_size), jnp.float32, -lim2, lim2)
    return w1, b1, w2, b2


def mlp_reference(x, w1, b1, w2, b2):
    h = jax.nn.sigmoid(x @ w1 + b1)
    return h @ w2 + b2


if __name__ == "__main__":
    # Iris-like problem: 4 input features, hidden_size=16, 3 output classes.
    input_size = 4
    hidden_size = 16
    output_size = 3

    key = jax.random.PRNGKey(0)
    kx, kp, kx2 = jax.random.split(key, 3)
    w1, b1, w2, b2 = init_params(kp, input_size, hidden_size, output_size)
    params = prepare_params(w1, b1, w2, b2)

    # Small demo batch (grid of 1 tile).
    batch = 8
    x = jax.random.normal(kx, (batch, input_size), dtype=jnp.float32)
    out = jax.block_until_ready(mlp_forward(x, params))
    ref = mlp_reference(x, w1, b1, w2, b2)
    assert out.shape == (batch, output_size)
    assert jnp.allclose(out, ref, atol=1e-5, rtol=1e-5)

    # Larger, non-tile-aligned batch: exercises >=2 grid steps and the partial
    # tail tile (no batch padding materialized, tail rows discarded on write).
    batch2 = 100
    x2 = jax.random.normal(kx2, (batch2, input_size), dtype=jnp.float32)
    out2 = jax.block_until_ready(mlp_forward(x2, params))
    ref2 = mlp_reference(x2, w1, b1, w2, b2)
    assert out2.shape == (batch2, output_size)
    assert jnp.allclose(out2, ref2, atol=1e-5, rtol=1e-5)

    print("KERNEL_OK")
</pallas_src>

<mosaic_0001>
module attributes {stable_mosaic.version = 11 : i64} {
  func.func @mlp_kernel(%arg0: i32, %arg1: memref<8x4xf32, #tpu.memory_space<vmem>>, %arg2: memref<4x16xf32, #tpu.memory_space<vmem>>, %arg3: memref<1x16xf32, #tpu.memory_space<vmem>>, %arg4: memref<16x128xf32, #tpu.memory_space<vmem>>, %arg5: memref<1x128xf32, #tpu.memory_space<vmem>>, %arg6: memref<8x3xf32, #tpu.memory_space<vmem>>) attributes {dimension_semantics = [#tpu.dimension_semantics<parallel>], iteration_bounds = array<i64: 1>, scalar_prefetch = 0 : i64, scratch_operands = 0 : i64, tpu.core_type = #tpu.core_type<tc>, window_params = [{transform_indices = @transform_0, window_bounds = array<i64: 8, 4>}, {pipeline_mode = #tpu.pipeline_mode<synchronous>, transform_indices = @transform_1, window_bounds = array<i64: 4, 16>}, {pipeline_mode = #tpu.pipeline_mode<synchronous>, transform_indices = @transform_2, window_bounds = array<i64: 1, 16>}, {pipeline_mode = #tpu.pipeline_mode<synchronous>, transform_indices = @transform_3, window_bounds = array<i64: 16, 128>}, {pipeline_mode = #tpu.pipeline_mode<synchronous>, transform_indices = @transform_4, window_bounds = array<i64: 1, 128>}, {transform_indices = @transform_5, window_bounds = array<i64: 8, 3>}]} {
    %c0 = arith.constant 0 : index
    %c0_0 = arith.constant 0 : index
    %0 = vector.load %arg1[%c0, %c0_0] : memref<8x4xf32, #tpu.memory_space<vmem>>, vector<8x4xf32>
    %c0_1 = arith.constant 0 : index
    %c0_2 = arith.constant 0 : index
    %1 = vector.load %arg2[%c0_1, %c0_2] : memref<4x16xf32, #tpu.memory_space<vmem>>, vector<4x16xf32>
    %cst = arith.constant dense<0.000000e+00> : vector<8x16xf32>
    %2 = tpu.matmul %0, %1, %cst {dimension_numbers = #tpu.dot_dimension_numbers<[1], [0], [0], [1], [0, 0, 1, 1], [], []>} : vector<8x4xf32>, vector<4x16xf32>, vector<8x16xf32> -> vector<8x16xf32>
    %c0_3 = arith.constant 0 : index
    %c0_4 = arith.constant 0 : index
    %3 = vector.load %arg3[%c0_3, %c0_4] : memref<1x16xf32, #tpu.memory_space<vmem>>, vector<1x16xf32>
    %4 = vector.broadcast %3 : vector<1x16xf32> to vector<8x16xf32>
    %5 = arith.addf %2, %4 : vector<8x16xf32>
    %6 = arith.negf %5 : vector<8x16xf32>
    %7 = math.exp %6 : vector<8x16xf32>
    %cst_5 = arith.constant 1.000000e+00 : f32
    %8 = vector.broadcast %cst_5 : f32 to vector<8x16xf32>
    %9 = arith.addf %8, %7 : vector<8x16xf32>
    %10 = arith.divf %8, %9 : vector<8x16xf32>
    %c0_6 = arith.constant 0 : index
    %c0_7 = arith.constant 0 : index
    %11 = vector.load %arg4[%c0_6, %c0_7] : memref<16x128xf32, #tpu.memory_space<vmem>>, vector<16x128xf32>
    %cst_8 = arith.constant dense<0.000000e+00> : vector<8x128xf32>
    %12 = tpu.matmul %10, %11, %cst_8 {dimension_numbers = #tpu.dot_dimension_numbers<[1], [0], [0], [1], [0, 0, 1, 1], [], []>} : vector<8x16xf32>, vector<16x128xf32>, vector<8x128xf32> -> vector<8x128xf32>
    %c0_9 = arith.constant 0 : index
    %c0_10 = arith.constant 0 : index
    %13 = vector.load %arg5[%c0_9, %c0_10] : memref<1x128xf32, #tpu.memory_space<vmem>>, vector<1x128xf32>
    %14 = vector.broadcast %13 : vector<1x128xf32> to vector<8x128xf32>
    %15 = arith.addf %12, %14 : vector<8x128xf32>
    %16 = vector.extract_strided_slice %15 {offsets = [0, 0], sizes = [8, 3], strides = [1, 1]} : vector<8x128xf32> to vector<8x3xf32>
    %c0_11 = arith.constant 0 : index
    %c0_12 = arith.constant 0 : index
    %17 = vector.load %arg6[%c0_11, %c0_12] : memref<8x3xf32, #tpu.memory_space<vmem>>, vector<8x3xf32>
    tpu.vector_store %arg6[%c0_11, %c0_12], %16 {strides = array<i32>} : memref<8x3xf32, #tpu.memory_space<vmem>>, vector<8x3xf32>,
    return
  }
  func.func @transform_0(%arg0: i32) -> (i32, i32) {
    %c0_i32 = arith.constant 0 : i32
    %c0_i32_0 = arith.constant 0 : i32
    return %arg0, %c0_i32 : i32, i32
  }
  func.func @transform_1(%arg0: i32) -> (i32, i32) {
    %c0_i32 = arith.constant 0 : i32
    %c0_i32_0 = arith.constant 0 : i32
    %c0_i32_1 = arith.constant 0 : i32
    return %c0_i32, %c0_i32_0 : i32, i32
  }
  func.func @transform_2(%arg0: i32) -> (i32, i32) {
    %c0_i32 = arith.constant 0 : i32
    %c0_i32_0 = arith.constant 0 : i32
    %c0_i32_1 = arith.constant 0 : i32
    return %c0_i32, %c0_i32_0 : i32, i32
  }
  func.func @transform_3(%arg0: i32) -> (i32, i32) {
    %c0_i32 = arith.constant 0 : i32
    %c0_i32_0 = arith.constant 0 : i32
    %c0_i32_1 = arith.constant 0 : i32
    return %c0_i32, %c0_i32_0 : i32, i32
  }
  func.func @transform_4(%arg0: i32) -> (i32, i32) {
    %c0_i32 = arith.constant 0 : i32
    %c0_i32_0 = arith.constant 0 : i32
    %c0_i32_1 = arith.constant 0 : i32
    return %c0_i32, %c0_i32_0 : i32, i32
  }
  func.func @transform_5(%arg0: i32) -> (i32, i32) {
    %c0_i32 = arith.constant 0 : i32
    %c0_i32_0 = arith.constant 0 : i32
    return %arg0, %c0_i32 : i32, i32
  }
}

</mosaic_0001>

<bundles_post_ra>
// kernel: tpu_custom_call.1
= control target key start
LH: loop header
LB: loop body
LE: loop exit
PB: predicated region body
PF: predicated region fallthrough
CT: control target
= control target key end

     0   :  { %10 = vsyncpa [#allocation3], 0  ;;  %s165_s21 = smov [#allocation2]   ;;  %s166_s23 = smov 128   ;;  %s216_s0 = inlined_call_operand.vmem [shape: f32[8,4], index: 0, kind: input, shape index: {}]   ;;  %s217_s1 = inlined_call_operand.vmem [shape: f32[4,16], index: 1, kind: input, shape index: {}]   ;;  %s218_s2 = inlined_call_operand.vmem [shape: f32[1,16], index: 2, kind: input, shape index: {}]   ;;  %s219_s3 = inlined_call_operand.hbm [shape: f32[16,128], index: 3, kind: input, shape index: {}]   ;;  %s220_s4 = inlined_call_operand.vmem [shape: f32[1,128], index: 4, kind: input, shape index: {}]   ;;  %s221_s5 = inlined_call_operand.vmem [shape: f32[8,3], index: 5, kind: output, shape index: {}]  }
   0x1   :  { %s21_s20 = sshll.u32 %s219_s3, 4  ;;  %s23_s22 = sshll.u32 %s165_s21, 4  ;;  %s22_s20 = int_to_ptr.hbm [resolvable:$true] %s21_s20  ;;  %s24_s22 = int_to_ptr.vmem [resolvable:$true] %s23_s22 }
   0x2   :  { %s167_s24 = smov 8  }
   0x3   :  { %29 = dma.hbm_to_vmem [thread:$0]  %s22_s20, 256, %s24_s22, [#allocation3], %s166_s23, %s166_s23, %s167_s24  }
   0x4   :  { %163 = dma.done.wait [#allocation3], 256  }
   0x5   :  { %164 = vsyncadd [#allocation3], 4294967040  ;;  %vm46_vm0 = vcmask 1043456   ;;  %vm42_vm1 = vcmask 31744   ;;  %v37_v0 = vld [vmem:[%s217_s1] sm:$0xf] }
   0x6   :  { %v36_v1 = vld [vmem:[%s216_s0] sm:$0xff]  ;;  %126 = vmatpush.msk.msra.mxu0 %vm46_vm0, %v37_v0  ;;  %v90_v2 = vld [vmem:[#allocation2 + $0x8] sm:$0xff]  ;;  %vm95_vm5 = vcmask 130048   ;;  %vm119_vm7 = vcmask 23552  }
   0x7   :  { %127 = vmatmul.msk.f32.vlgmr.msra.gmra.mxu0 %vm42_vm1, %v36_v1  ;;  %v89_v3 = vld [vmem:[#allocation2] sm:$0xff]  ;;  %113 = vmatpush.msra.mxu1 %v90_v2 }
   0x8   :  { %v133_v4 = vld [vmem:[%s218_s2] ss:$0 sm:$0xff] }
   0x9   :  { %114 = vmatpush.msra.mxu1 %v89_v3  ;;  %v134_v20 = vld [vmem:[%s220_s4] ss:$0 sm:$0xff] }
  0x84   :  { %v67_v5 = vpop.f32.mrf.mxu0 }
  0x85   :  { %v68_v6 = vadd.f32 %v133_v4, %v67_v5 }
  0x87   :  { %v128_v7 = vmul.f32 -1.442695, %v68_v6 }
  0x89   :  { %135 = vpow2.f32 %v128_v7 }
  0x8f   :  { %v136_v8 = vpop.eup %135 }
  0x90   :  { %v73_v9 = vadd.f32 1.0, %v136_v8 }
  0x92   :  { %137 = vrcp.f32 %v73_v9  ;;  %v85_v13 = vand.u32 2147483648, %v73_v9  ;;  %v83_v15 = vand.u32 2147483647, %v73_v9  ;;  %vm79_vm3 = vweird.f32 %v73_v9 }
  0x94   :  { %v86_v17 = vor.u32 1.1754944e-38, %v85_v13  ;;  %vm84_vm6 = vcmp.eq.f32.partialorder %v83_v15, 8.507059e+37 }
  0x98   :  { %v138_v10 = vpop.eup %137 }
  0x99   :  { %v75_v11 = vmul.f32 %v138_v10, %v73_v9  ;;  %vm80_vm2 = vweird.f32 %v138_v10 }
  0x9a   :  { %vm81_vm4 = vmor %vm79_vm3, %vm80_vm2 }
  0x9b   :  { %v76_v12 = vsub.f32 1.0, %v75_v11 }
  0x9d   :  { %v77_v14 = vmul.f32 %v138_v10, %v76_v12 }
  0x9f   :  { %v78_v16 = vadd.f32 %v138_v10, %v77_v14 }
  0xa1   :  { %v82_v18 = vsel %vm81_vm4, %v138_v10, %v78_v16 }
  0xa2   :  { %v87_v19 = vsel %vm84_vm6, %v86_v17, %v82_v18 }
  0xa3   :  { %129 = vmatmul.msk.f32.vlgmr.msra.gmra.mxu1 %vm95_vm5, %v87_v19 }
 0x120   :  { %v116_v21 = vpop.f32.mrf.mxu1 }
 0x121   :  { %v117_v22 = vadd.f32 %v134_v20, %v116_v21 }
 0x123   :  { %120 = vst.msk [vmem:[%s221_s5] sm:$0xff] %vm119_vm7, %v117_v22 }
 0x124   :  { %125 = vsyncpa [#allocation3], 1 }

</bundles_post_ra>
